<compile_context>
chip_gen: v7x
topology: tpu7x:2x2x1
jax: 0.10.0
libtpu: 0.0.40
codegen_flags: <defaults>
</compile_context>

<pallas_src>
import functools
import math

import jax
import jax.numpy as jnp
from jax.experimental import pallas as pl
from jax.experimental.pallas import tpu as pltpu

LANE = 128


# ----------------------------- helpers --------------------------------------
def _l2_normalize(x, axis=-1, eps=1e-12):
    # matches torch.nn.functional.normalize(p=2, eps=1e-12)
    norm = jnp.sqrt(jnp.sum(x * x, axis=axis, keepdims=True))
    return x / jnp.maximum(norm, eps)


# ----------------------------- Pallas kernel --------------------------------
def spatial_memory_kernel(
    x_ref,       # [TM, C]     bf16 raw query rows (L2 scale folded post-matmul)
    w1_ref,      # [C, hid]    bf16 query MLP layer 1
    w2_ref,      # [hid, D]    bf16 query MLP layer 2
    mcn_t_ref,   # [D, N]      bf16 normalized centered memory (transposed)
    m1_ref,      # [N, D+1]    bf16 [M_flat | 1]  (ones col -> L1 sum via MXU)
    consts_ref,  # [8, 128]    f32  packed b1 / b2 / var_m
    out_ref,     # [TM, OUT_W] f32  fused slab [z | w | retr]
    *,
    shrink_thres: float,
):
    hid = w1_ref.shape[1]
    D = w2_ref.shape[1]
    N = mcn_t_ref.shape[1]

    # packed small constants
    b1 = consts_ref[0:1, 0:hid]      # [1, hid]
    b2 = consts_ref[1:2, 0:D]        # [1, D]
    var_m = consts_ref[2:3, 0:N]     # [1, N]   per-slot unbiased variance

    # ---- query MLP.  L2-normalize folded into the first matmul:
    #      normalize(x) @ W1 == (x @ W1) * (1/||x||)  (per-row scalar commutes)
    x_bf = x_ref[...]
    x = x_bf.astype(jnp.float32)
    inv_norm = jax.lax.rsqrt(
        jnp.maximum(jnp.sum(x * x, axis=-1, keepdims=True), 1e-24))
    # NOTE: [TM,C]@[C,hid] is tiny (C=4, hid=2) -> latency-only on the MXU.
    # A VPU broadcast-MAC form is possible but kept on the otherwise-idle MXU
    # for generality / simpler codegen (review item, bundle-dump gated).
    h = jnp.dot(x_bf, w1_ref[...], preferred_element_type=jnp.float32)
    h = h * inv_norm + b1
    h = jnp.maximum(h, 0.0).astype(jnp.bfloat16)
    z = jnp.dot(h, w2_ref[...], preferred_element_type=jnp.float32) + b2  # [TM,D] f32

    # ---- SSIM-like similarity ----
    mu_z = jnp.mean(z, axis=-1, keepdims=True)
    zc = z - mu_z
    ss = jnp.sum(zc * zc, axis=-1, keepdims=True)
    var_z = ss * (1.0 / (D - 1))                          # unbiased (torch.var)
    zc_n = (zc * jax.lax.rsqrt(jnp.maximum(ss, 1e-24))).astype(jnp.bfloat16)
    sim = jnp.dot(zc_n, mcn_t_ref[...], preferred_element_type=jnp.float32)  # [TM,N]
    sim = sim * pl.reciprocal(1.0 + jnp.abs(var_z - var_m), approx=True)

    # ---- softmax over memory slots ----
    # INVARIANT: sim = cosine * factor with factor <= 1, hence |sim| <= 1 and
    # exp(sim) cannot overflow -> max-subtraction is safely omitted.
    e = jnp.exp(sim)
    w = e * pl.reciprocal(jnp.sum(e, axis=-1, keepdims=True), approx=True)

    # ---- hard shrink (relu(w - thres)) ----
    if shrink_thres > 0:
        w = jnp.maximum(w - shrink_thres, 0.0)

    # ---- fused readout + L1-renorm sum on the MXU:
    #      [retr_un | sum_w] = w @ [M_flat | 1]
    ro = jnp.dot(w.astype(jnp.bfloat16), m1_ref[...],
                 preferred_element_type=jnp.float32)      # [TM, D+1]
    if shrink_thres > 0:
        # exact reciprocal for the final renorm (cheap [TM,1] op)
        inv_l1 = 1.0 / jnp.maximum(ro[:, D:D + 1], 1e-12)
        w = w * inv_l1
        retr = ro[:, :D] * inv_l1
    else:
        retr = ro[:, :D]

    # ---- direct sub-slice stores into the 128-lane slab (no concat, no zero
    # pad materialization); HBM writeback is lane-dense via the out BlockSpec.
    out_ref[:, 0:D] = z
    out_ref[:, D:D + N] = w
    out_ref[:, D + N:2 * D + N] = retr


# ----------------------------- parameter init -------------------------------
def init_params(key, feature_dim, memory_size, memory_dim):
    memory_h = int(math.sqrt(memory_size))
    memory_w = memory_size // memory_h
    C, D = feature_dim, memory_dim
    keys = jax.random.split(key, 11)

    def lin(k, fan_in, shape):
        bound = 1.0 / math.sqrt(fan_in)
        return jax.random.uniform(k, shape, jnp.float32, -bound, bound)

    H = jax.random.normal(keys[0], (memory_h, memory_w, D), jnp.float32)
    H = _l2_normalize(H, axis=-1)
    params = {
        "H": H,
        # mlp_spa_query: Linear(C, C//2) -> ReLU -> Linear(C//2, D)
        "W1": lin(keys[1], C, (C, C // 2)),
        "b1": lin(keys[2], C, (C // 2,)),
        "W2": lin(keys[3], C // 2, (C // 2, D)),
        "b2": lin(keys[4], C // 2, (D,)),
        # mlp_spa_memory: Linear(D, D//2) -> ReLU -> Linear(D//2, D)
        "Wm1": lin(keys[5], D, (D, D // 2)),
        "bm1": lin(keys[6], D, (D // 2,)),
        "Wm2": lin(keys[7], D // 2, (D // 2, D)),
        "bm2": lin(keys[8], D // 2, (D,)),
        # memsize_spa: Linear(D, C)
        "W3": lin(keys[9], D, (D, C)),
        "b3": lin(keys[10], D, (C,)),
    }
    return params, memory_h, memory_w


# ----------------------------- forward wrapper -------------------------------
def spatial_memory_forward(z, params, memory_h, memory_w,
                           shrink_thres=0.0025, tile_m=None):
    B, C, Hh, Ww = z.shape
    D = params["W2"].shape[1]
    hid = params["W1"].shape[1]
    N = memory_h * memory_w
    BHW = B * Hh * Ww

    # ---- memory branch (tiny N x D) in plain JAX ----
    Hn = _l2_normalize(params["H"], axis=-1)
    hm = jnp.maximum(Hn @ params["Wm1"] + params["bm1"], 0.0)
    M_spa = hm @ params["Wm2"] + params["bm2"]                  # [mh, mw, D]
    M_flat = M_spa.reshape(N, D)
    mu_m = jnp.mean(M_flat, axis=-1, keepdims=True)
    Mc = M_flat - mu_m
    var_m = jnp.sum(Mc * Mc, axis=-1, keepdims=True) / (D - 1)  # unbiased
    Mcn_T = _l2_normalize(Mc, axis=-1).T                        # [D, N]
    # readout operand with an appended ones column: L1-renorm denominator
    # comes out of the same MXU matmul as the retrieved memory.
    M_ones = jnp.concatenate(
        [M_flat, jnp.ones((N, 1), jnp.float32)], axis=-1).astype(jnp.bfloat16)

    # ---- pack tiny constants into one (8,128)-aligned f32 buffer ----
    assert max(hid, D, N) <= LANE
    consts = jnp.zeros((8, LANE), jnp.float32)
    consts = consts.at[0, :hid].set(params["b1"])
    consts = consts.at[1, :D].set(params["b2"])
    consts = consts.at[2, :N].set(var_m[:, 0])

    # ---- token layout + row tiling ----
    x = jnp.transpose(z, (0, 2, 3, 1)).reshape(BHW, C).astype(jnp.float32)

    if tile_m is None:
        # ~512-row tiles, but keep >= 8 grid steps (>= 4 per TC on v7x) so
        # double-buffering overlaps DMA with compute, and [TM,1] lane-sparse
        # column temporaries stay vreg-resident.
        tile_m = max(8, min(512, ((-(-BHW // 8) + 7) // 8) * 8))
    tile_m = ((tile_m + 7) // 8) * 8
    grid_m = pl.cdiv(BHW, tile_m)
    BHW_pad = grid_m * tile_m
    if BHW_pad != BHW:
        x = jnp.pad(x, ((0, BHW_pad - BHW), (0, 0)))   # zero rows are harmless

    x_bf = x.astype(jnp.bfloat16)
    w1_bf = params["W1"].astype(jnp.bfloat16)
    w2_bf = params["W2"].astype(jnp.bfloat16)
    mcn_t_bf = Mcn_T.astype(jnp.bfloat16)

    SLAB = 2 * D + N                                   # = 128 for D=32, N=64
    OUT_W = ((SLAB + LANE - 1) // LANE) * LANE         # lane-dense slab width

    def rep_spec(arr):  # full-array block, replicated across the grid
        return pl.BlockSpec(arr.shape, lambda i: (0,) * arr.ndim)

    kernel = functools.partial(spatial_memory_kernel, shrink_thres=shrink_thres)

    slab = pl.pallas_call(
        kernel,
        out_shape=jax.ShapeDtypeStruct((BHW_pad, OUT_W), jnp.float32),
        grid_spec=pltpu.PrefetchScalarGridSpec(
            num_scalar_prefetch=0,
            grid=(grid_m,),
            in_specs=[
                pl.BlockSpec((tile_m, C), lambda i: (i, 0)),
                rep_spec(w1_bf), rep_spec(w2_bf),
                rep_spec(mcn_t_bf), rep_spec(M_ones), rep_spec(consts),
            ],
            out_specs=pl.BlockSpec((tile_m, OUT_W), lambda i: (i, 0)),
        ),
        compiler_params=pltpu.CompilerParams(
            dimension_semantics=("parallel",)),
    )(x_bf, w1_bf, w2_bf, mcn_t_bf, M_ones, consts)

    # ---- split fused slab, drop row padding, reshape back ----
    slab = slab[:BHW]
    z_spa = slab[:, 0:D]
    w_spa = slab[:, D:D + N]
    retrieved = slab[:, D + N:D + N + D]

    # memsize_spa (tiny [BHW,D]@[D,C]) done here -> keeps the kernel slab at
    # exactly 128 lanes.
    out_row = retrieved @ params["W3"] + params["b3"]

    output = out_row.reshape(B, Hh, Ww, C).transpose(0, 3, 1, 2)        # [B,C,H,W]
    att = w_spa.reshape(B, Hh, Ww, N).mean(axis=(1, 2))                 # [B,N]
    att_spatial = jnp.broadcast_to(att[:, :, None, None], (B, N, Hh, Ww))
    return {
        "output": output,
        "attention": att_spatial,
        "retrieved_memory": retrieved.reshape(B, Hh, Ww, D),
        "processed_query": z_spa.reshape(B, Hh, Ww, D),
        "processed_memory": M_spa,
        "raw_attention": w_spa,
    }


# ----------------------------- pure-JAX reference ----------------------------
def reference_forward(z, params, memory_h, memory_w, shrink_thres=0.0025):
    B, C, Hh, Ww = z.shape
    D = params["W2"].shape[1]
    N = memory_h * memory_w
    x = jnp.transpose(z, (0, 2, 3, 1)).reshape(-1, C)
    xn = _l2_normalize(x, axis=-1)
    h = jnp.maximum(xn @ params["W1"] + params["b1"], 0.0)
    Z = h @ params["W2"] + params["b2"]
    Hn = _l2_normalize(params["H"], axis=-1)
    hm = jnp.maximum(Hn @ params["Wm1"] + params["bm1"], 0.0)
    M = (hm @ params["Wm2"] + params["bm2"]).reshape(N, D)
    mu_z = Z.mean(-1, keepdims=True); mu_m = M.mean(-1, keepdims=True)
    Zc = Z - mu_z; Mc = M - mu_m
    var_z = jnp.sum(Zc * Zc, -1, keepdims=True) / (D - 1)
    var_m = jnp.sum(Mc * Mc, -1, keepdims=True) / (D - 1)
    sim = _l2_normalize(Zc, -1) @ _l2_normalize(Mc, -1).T
    sim = sim * (1.0 / (1.0 + jnp.abs(var_z - var_m.T)))
    w = jax.nn.softmax(sim, axis=1)
    if shrink_thres > 0:
        w = jnp.maximum(w - shrink_thres, 0.0)
        w = w / jnp.maximum(jnp.sum(jnp.abs(w), -1, keepdims=True), 1e-12)
    retr = w @ M
    out = retr @ params["W3"] + params["b3"]
    return out.reshape(B, Hh, Ww, C).transpose(0, 3, 1, 2), w


# ----------------------------- main ------------------------------------------
if __name__ == "__main__":
    # small shapes consistent with the module
    B, C, Hh, Ww = 2, 4, 16, 16          # feature_dim = C = 4
    memory_size, memory_dim = 64, 32     # memory_h = memory_w = 8, D = 32
    shrink_thres = 0.0025

    key = jax.random.PRNGKey(0)
    kp, kz = jax.random.split(key)
    params, mh, mw = init_params(kp, C, memory_size, memory_dim)
    z = jax.random.normal(kz, (B, C, Hh, Ww), jnp.float32)

    out = spatial_memory_forward(z, params, mh, mw, shrink_thres=shrink_thres)
    jax.block_until_ready(out)

    # sanity check against a pure-f32 JAX reference.  bf16 MXU operands
    # (query/sim/readout) + approx EUP reciprocals -> relaxed 3e-3 tolerance.
    ref_out, ref_w = reference_forward(z, params, mh, mw, shrink_thres)
    assert jnp.allclose(out["output"], ref_out, atol=3e-3, rtol=3e-3), \
        float(jnp.max(jnp.abs(out["output"] - ref_out)))
    assert jnp.allclose(out["raw_attention"], ref_w, atol=3e-3, rtol=3e-3), \
        float(jnp.max(jnp.abs(out["raw_attention"] - ref_w)))

    print("KERNEL_OK")
</pallas_src>

<mosaic_0001>
module attributes {stable_mosaic.version = 11 : i64} {
  func.func @spatial_memory_kernel(%arg0: i32, %arg1: memref<64x4xbf16, #tpu.memory_space<vmem>>, %arg2: memref<4x2xbf16, #tpu.memory_space<vmem>>, %arg3: memref<2x32xbf16, #tpu.memory_space<vmem>>, %arg4: memref<32x64xbf16, #tpu.memory_space<vmem>>, %arg5: memref<64x33xbf16, #tpu.memory_space<vmem>>, %arg6: memref<8x128xf32, #tpu.memory_space<vmem>>, %arg7: memref<64x128xf32, #tpu.memory_space<vmem>>) attributes {dimension_semantics = [#tpu.dimension_semantics<parallel>], iteration_bounds = array<i64: 8>, scalar_prefetch = 0 : i64, scratch_operands = 0 : i64, tpu.core_type = #tpu.core_type<tc>, window_params = [{transform_indices = @transform_0, window_bounds = array<i64: 64, 4>}, {pipeline_mode = #tpu.pipeline_mode<synchronous>, transform_indices = @transform_1, window_bounds = array<i64: 4, 2>}, {pipeline_mode = #tpu.pipeline_mode<synchronous>, transform_indices = @transform_2, window_bounds = array<i64: 2, 32>}, {pipeline_mode = #tpu.pipeline_mode<synchronous>, transform_indices = @transform_3, window_bounds = array<i64: 32, 64>}, {pipeline_mode = #tpu.pipeline_mode<synchronous>, transform_indices = @transform_4, window_bounds = array<i64: 64, 33>}, {pipeline_mode = #tpu.pipeline_mode<synchronous>, transform_indices = @transform_5, window_bounds = array<i64: 8, 128>}, {transform_indices = @transform_6, window_bounds = array<i64: 64, 128>}]} {
    %c0 = arith.constant 0 : index
    %c0_0 = arith.constant 0 : index
    %0 = vector.load %arg6[%c0, %c0_0] : memref<8x128xf32, #tpu.memory_space<vmem>>, vector<1x2xf32>
    %c1 = arith.constant 1 : index
    %c0_1 = arith.constant 0 : index
    %1 = vector.load %arg6[%c1, %c0_1] : memref<8x128xf32, #tpu.memory_space<vmem>>, vector<1x32xf32>
    %c2 = arith.constant 2 : index
    %c0_2 = arith.constant 0 : index
    %2 = vector.load %arg6[%c2, %c0_2] : memref<8x128xf32, #tpu.memory_space<vmem>>, vector<1x64xf32>
    %c0_3 = arith.constant 0 : index
    %c0_4 = arith.constant 0 : index
    %3 = vector.load %arg1[%c0_3, %c0_4] : memref<64x4xbf16, #tpu.memory_space<vmem>>, vector<64x4xbf16>
    %4 = arith.extf %3 : vector<64x4xbf16> to vector<64x4xf32>
    %5 = arith.mulf %4, %4 : vector<64x4xf32>
    %cst = arith.constant dense<0.000000e+00> : vector<64xf32>
    %6 = vector.multi_reduction <add>, %5, %cst [1] : vector<64x4xf32> to vector<64xf32>
    %7 = vector.shape_cast %6 : vector<64xf32> to vector<64x1xf32>
    %cst_5 = arith.constant 1.000000e-24 : f32
    %8 = vector.broadcast %cst_5 : f32 to vector<64x1xf32>
    %9 = arith.maximumf %7, %8 : vector<64x1xf32>
    %10 = math.rsqrt %9 : vector<64x1xf32>
    %c0_6 = arith.constant 0 : index
    %c0_7 = arith.constant 0 : index
    %11 = vector.load %arg2[%c0_6, %c0_7] : memref<4x2xbf16, #tpu.memory_space<vmem>>, vector<4x2xbf16>
    %cst_8 = arith.constant dense<0.000000e+00> : vector<64x2xf32>
    %12 = tpu.matmul %3, %11, %cst_8 {dimension_numbers = #tpu.dot_dimension_numbers<[1], [0], [0], [1], [0, 0, 1, 1], [], []>} : vector<64x4xbf16>, vector<4x2xbf16>, vector<64x2xf32> -> vector<64x2xf32>
    %13 = vector.broadcast %10 : vector<64x1xf32> to vector<64x2xf32>
    %14 = arith.mulf %12, %13 : vector<64x2xf32>
    %15 = vector.broadcast %0 : vector<1x2xf32> to vector<64x2xf32>
    %16 = arith.addf %14, %15 : vector<64x2xf32>
    %cst_9 = arith.constant 0.000000e+00 : f32
    %17 = vector.broadcast %cst_9 : f32 to vector<64x2xf32>
    %18 = arith.maximumf %16, %17 : vector<64x2xf32>
    %19 = arith.truncf %18 : vector<64x2xf32> to vector<64x2xbf16>
    %c0_10 = arith.constant 0 : index
    %c0_11 = arith.constant 0 : index
    %20 = vector.load %arg3[%c0_10, %c0_11] : memref<2x32xbf16, #tpu.memory_space<vmem>>, vector<2x32xbf16>
    %cst_12 = arith.constant dense<0.000000e+00> : vector<64x32xf32>
    %21 = tpu.matmul %19, %20, %cst_12 {dimension_numbers = #tpu.dot_dimension_numbers<[1], [0], [0], [1], [0, 0, 1, 1], [], []>} : vector<64x2xbf16>, vector<2x32xbf16>, vector<64x32xf32> -> vector<64x32xf32>
    %22 = vector.broadcast %1 : vector<1x32xf32> to vector<64x32xf32>
    %23 = arith.addf %21, %22 : vector<64x32xf32>
    %cst_13 = arith.constant dense<0.000000e+00> : vector<64xf32>
    %24 = vector.multi_reduction <add>, %23, %cst_13 [1] : vector<64x32xf32> to vector<64xf32>
    %25 = vector.shape_cast %24 : vector<64xf32> to vector<64x1xf32>
    %cst_14 = arith.constant 3.200000e+01 : f32
    %26 = vector.broadcast %cst_14 : f32 to vector<64x1xf32>
    %27 = arith.divf %25, %26 : vector<64x1xf32>
    %28 = vector.broadcast %27 : vector<64x1xf32> to vector<64x32xf32>
    %29 = arith.subf %23, %28 : vector<64x32xf32>
    %30 = arith.mulf %29, %29 : vector<64x32xf32>
    %cst_15 = arith.constant dense<0.000000e+00> : vector<64xf32>
    %31 = vector.multi_reduction <add>, %30, %cst_15 [1] : vector<64x32xf32> to vector<64xf32>
    %32 = vector.shape_cast %31 : vector<64xf32> to vector<64x1xf32>
    %cst_16 = arith.constant 0.0322580636 : f32
    %33 = vector.broadcast %cst_16 : f32 to vector<64x1xf32>
    %34 = arith.mulf %32, %33 : vector<64x1xf32>
    %cst_17 = arith.constant 1.000000e-24 : f32
    %35 = vector.broadcast %cst_17 : f32 to vector<64x1xf32>
    %36 = arith.maximumf %32, %35 : vector<64x1xf32>
    %37 = math.rsqrt %36 : vector<64x1xf32>
    %38 = vector.broadcast %37 : vector<64x1xf32> to vector<64x32xf32>
    %39 = arith.mulf %29, %38 : vector<64x32xf32>
    %40 = arith.truncf %39 : vector<64x32xf32> to vector<64x32xbf16>
    %c0_18 = arith.constant 0 : index
    %c0_19 = arith.constant 0 : index
    %41 = vector.load %arg4[%c0_18, %c0_19] : memref<32x64xbf16, #tpu.memory_space<vmem>>, vector<32x64xbf16>
    %cst_20 = arith.constant dense<0.000000e+00> : vector<64x64xf32>
    %42 = tpu.matmul %40, %41, %cst_20 {dimension_numbers = #tpu.dot_dimension_numbers<[1], [0], [0], [1], [0, 0, 1, 1], [], []>} : vector<64x32xbf16>, vector<32x64xbf16>, vector<64x64xf32> -> vector<64x64xf32>
    %43 = vector.broadcast %34 : vector<64x1xf32> to vector<64x64xf32>
    %44 = vector.broadcast %2 : vector<1x64xf32> to vector<64x64xf32>
    %45 = arith.subf %43, %44 : vector<64x64xf32>
    %46 = math.absf %45 : vector<64x64xf32>
    %cst_21 = arith.constant 1.000000e+00 : f32
    %47 = vector.broadcast %cst_21 : f32 to vector<64x64xf32>
    %48 = arith.addf %47, %46 : vector<64x64xf32>
    %49 = tpu.reciprocal %48 {approx = true} : vector<64x64xf32> -> vector<64x64xf32>
    %50 = arith.mulf %42, %49 : vector<64x64xf32>
    %51 = math.exp %50 : vector<64x64xf32>
    %cst_22 = arith.constant dense<0.000000e+00> : vector<64xf32>
    %52 = vector.multi_reduction <add>, %51, %cst_22 [1] : vector<64x64xf32> to vector<64xf32>
    %53 = vector.shape_cast %52 : vector<64xf32> to vector<64x1xf32>
    %54 = tpu.reciprocal %53 {approx = true} : vector<64x1xf32> -> vector<64x1xf32>
    %55 = vector.broadcast %54 : vector<64x1xf32> to vector<64x64xf32>
    %56 = arith.mulf %51, %55 : vector<64x64xf32>
    %cst_23 = arith.constant 2.500000e-03 : f32
    %57 = vector.broadcast %cst_23 : f32 to vector<64x64xf32>
    %58 = arith.subf %56, %57 : vector<64x64xf32>
    %cst_24 = arith.constant 0.000000e+00 : f32
    %59 = vector.broadcast %cst_24 : f32 to vector<64x64xf32>
    %60 = arith.maximumf %58, %59 : vector<64x64xf32>
    %61 = arith.truncf %60 : vector<64x64xf32> to vector<64x64xbf16>
    %c0_25 = arith.constant 0 : index
    %c0_26 = arith.constant 0 : index
    %62 = vector.load %arg5[%c0_25, %c0_26] : memref<64x33xbf16, #tpu.memory_space<vmem>>, vector<64x33xbf16>
    %cst_27 = arith.constant dense<0.000000e+00> : vector<64x33xf32>
    %63 = tpu.matmul %61, %62, %cst_27 {dimension_numbers = #tpu.dot_dimension_numbers<[1], [0], [0], [1], [0, 0, 1, 1], [], []>} : vector<64x64xbf16>, vector<64x33xbf16>, vector<64x33xf32> -> vector<64x33xf32>
    %64 = vector.extract_strided_slice %63 {offsets = [0, 32], sizes = [64, 1], strides = [1, 1]} : vector<64x33xf32> to vector<64x1xf32>
    %cst_28 = arith.constant 9.99999996E-13 : f32
    %65 = vector.broadcast %cst_28 : f32 to vector<64x1xf32>
    %66 = arith.maximumf %64, %65 : vector<64x1xf32>
    %cst_29 = arith.constant 1.000000e+00 : f32
    %67 = vector.broadcast %cst_29 : f32 to vector<64x1xf32>
    %68 = arith.divf %67, %66 : vector<64x1xf32>
    %69 = vector.broadcast %68 : vector<64x1xf32> to vector<64x64xf32>
    %70 = arith.mulf %60, %69 : vector<64x64xf32>
    %71 = vector.extract_strided_slice %63 {offsets = [0, 0], sizes = [64, 32], strides = [1, 1]} : vector<64x33xf32> to vector<64x32xf32>
    %72 = vector.broadcast %68 : vector<64x1xf32> to vector<64x32xf32>
    %73 = arith.mulf %71, %72 : vector<64x32xf32>
    %c0_30 = arith.constant 0 : index
    %c0_31 = arith.constant 0 : index
    %74 = vector.load %arg7[%c0_30, %c0_31] : memref<64x128xf32, #tpu.memory_space<vmem>>, vector<64x32xf32>
    tpu.vector_store %arg7[%c0_30, %c0_31], %23 {strides = array<i32>} : memref<64x128xf32, #tpu.memory_space<vmem>>, vector<64x32xf32>,
    %c0_32 = arith.constant 0 : index
    %c32 = arith.constant 32 : index
    %75 = vector.load %arg7[%c0_32, %c32] : memref<64x128xf32, #tpu.memory_space<vmem>>, vector<64x64xf32>
    tpu.vector_store %arg7[%c0_32, %c32], %70 {strides = array<i32>} : memref<64x128xf32, #tpu.memory_space<vmem>>, vector<64x64xf32>,
    %c0_33 = arith.constant 0 : index
    %c96 = arith.constant 96 : index
    %76 = vector.load %arg7[%c0_33, %c96] : memref<64x128xf32, #tpu.memory_space<vmem>>, vector<64x32xf32>
    tpu.vector_store %arg7[%c0_33, %c96], %73 {strides = array<i32>} : memref<64x128xf32, #tpu.memory_space<vmem>>, vector<64x32xf32>,
    return
  }
  func.func @transform_0(%arg0: i32) -> (i32, i32) {
    %c0_i32 = arith.constant 0 : i32
    %c0_i32_0 = arith.constant 0 : i32
    return %arg0, %c0_i32 : i32, i32
  }
  func.func @transform_1(%arg0: i32) -> (i32, i32) {
    %c0_i32 = arith.constant 0 : i32
    %c0_i32_0 = arith.constant 0 : i32
    %c0_i32_1 = arith.constant 0 : i32
    return %c0_i32, %c0_i32_0 : i32, i32
  }
  func.func @transform_2(%arg0: i32) -> (i32, i32) {
    %c0_i32 = arith.constant 0 : i32
    %c0_i32_0 = arith.constant 0 : i32
    %c0_i32_1 = arith.constant 0 : i32
    return %c0_i32, %c0_i32_0 : i32, i32
  }
  func.func @transform_3(%arg0: i32) -> (i32, i32) {
    %c0_i32 = arith.constant 0 : i32
    %c0_i32_0 = arith.constant 0 : i32
    %c0_i32_1 = arith.constant 0 : i32
    return %c0_i32, %c0_i32_0 : i32, i32
  }
  func.func @transform_4(%arg0: i32) -> (i32, i32) {
    %c0_i32 = arith.constant 0 : i32
    %c0_i32_0 = arith.constant 0 : i32
    %c0_i32_1 = arith.constant 0 : i32
    return %c0_i32, %c0_i32_0 : i32, i32
  }
  func.func @transform_5(%arg0: i32) -> (i32, i32) {
    %c0_i32 = arith.constant 0 : i32
    %c0_i32_0 = arith.constant 0 : i32
    %c0_i32_1 = arith.constant 0 : i32
    return %c0_i32, %c0_i32_0 : i32, i32
  }
  func.func @transform_6(%arg0: i32) -> (i32, i32) {
    %c0_i32 = arith.constant 0 : i32
    %c0_i32_0 = arith.constant 0 : i32
    return %arg0, %c0_i32 : i32, i32
  }
}

</mosaic_0001>

<bundles_post_ra>
// kernel: tpu_custom_call.1
= control target key start
LH: loop header
LB: loop body
LE: loop exit
PB: predicated region body
PF: predicated region fallthrough
CT: control target
= control target key end

     0   :  { %11 = vsyncpa [#allocation3], 0  ;;  %s1968_s0 = inlined_call_operand.vmem [shape: bf16[512,4], index: 0, kind: input, shape index: {}]   ;;  %s1969_s1 = inlined_call_operand.vmem [shape: bf16[4,2], index: 1, kind: input, shape index: {}]   ;;  %s1970_s2 = inlined_call_operand.vmem [shape: bf16[2,32], index: 2, kind: input, shape index: {}]   ;;  %s1971_s3 = inlined_call_operand.vmem [shape: bf16[32,64], index: 3, kind: input, shape index: {}]   ;;  %s1972_s4 = inlined_call_operand.vmem [shape: bf16[64,33], index: 4, kind: input, shape index: {}]   ;;  %s1973_s5 = inlined_call_operand.vmem [shape: f32[8,128], index: 5, kind: input, shape index: {}]   ;;  %s1974_s6 = inlined_call_operand.hbm [shape: f32[512,128], index: 6, kind: output, shape index: {}]  }
   0x1   :  { %13 = vsyncpa [#allocation3 + $0x1], 0  ;;  %s1607_s21 = smov 0   ;;  %s1609_s22 = smov 0  }
   0x2   :  { %s1611_s23 = smov 0   ;;  %s1613_s24 = smov 0  }
   0x3 LB: > { %s1628_s25 = sadd.s32 4294967295, %s1564_s24   ;;  %s1222_s26 = sadd.s32 4294967294, %s1564_s24   ;;  %s1564_s24 = sphi %s1613_s24, %s1980_s24   ;;  %s1560_s23 = sphi %s1611_s23, %s1979_s23   ;;  %s1556_s22 = sphi %s1609_s22, %s1978_s22   ;;  %s1552_s21 = sphi %s1607_s21, %s1977_s21  }
   0x4   : > { %s1632_s27 = sadd.s32 1, %s1564_s24   ;;  %s157_s28 = sadd.s32 1, %s1560_s23 }
   0x5   : > { %s154_s29 = ssub.s32 %s1564_s24, %s1632_s27  ;;  %p167_p0 = scmp.ne.s32.totalorder %s1560_s23, %s1556_s22 }
   0x6   : > { %p155_p1 = scmp.eq.s32.totalorder %s154_s29, 0  ;;  %p168_p2 = scmp.eq.s32.totalorder %s1628_s25, 7 }
   0x7   : > { %p173_p3 = scmp.ne.s32.totalorder %s1556_s22, %s1552_s21  ;;  %p174_p4 = scmp.eq.s32.totalorder %s1222_s26, 7 }
   0x8   : > { %s1643_s30 = scalar_select %p155_p1, %s1560_s23, %s157_s28  }
   0x9   : > { %p1645_p5 = por %p168_p2, %p167_p0  ;;  %p1649_p6 = por %p174_p4, %p173_p3 }
   0xa   : > { %p1225_p7 = scmp.ge.s32.totalorder %s1564_s24, 1  ;;  %p216_p8 = scmp.lt.s32.totalorder %s1564_s24, 9 }
   0xc   : > { %p217_p9 = pnand %p1225_p7, %p216_p8 }
   0xd   : > { %v322_v0 = vld [vmem:[%s1969_s1] sm:$0x3] (!%p217_p9)  ;;  %vm355_vm0 = vcmask (!%p217_p9), 1041408   ;;  %s1227_s11 = sshll.u32 (!%p217_p9), %s1628_s25, 3  ;;  %vm281_vm1 = vcmask (!%p217_p9), 31744   ;;  %vm474_vm2 = vcmask (!%p217_p9), 1040384  }
   0xe   : > { %220 = sbr.rel (%p217_p9) target bundleno = 1697 (0x6a1), region = 44  ;;  %1344 = vmatprep.subr.msk.bf16.mxu0 (!%p217_p9), %vm355_vm0, %v322_v0  ;;  %v357_v1 = vsel (!%p217_p9), %vm355_vm0, %v322_v0, 0  ;;  %p247_p10 = scmp.lt.s32.totalorder (!%p217_p9), %s1227_s11, 63  ;;  %v456_v30 = vld [vmem:[%s1970_s2] sm:$0x1] (!%p217_p9)  ;;  %vm461_vm3 = vcmask (!%p217_p9), 15360  }
   0xf   : > { %1297 = vmatpush3.bf16.msra.mxu0 (!%p217_p9), %v357_v1  ;;  %1345 = vmatprep.subr.msk.bf16.mxu1 (!%p217_p9), %vm474_vm2, %v456_v30  ;;  %v476_v31 = vsel (!%p217_p9), %vm474_vm2, %v456_v30, 0  ;;  %v1237_v51 = vld [vmem:[%s1973_s5] ss:$0 sm:$0xff] (!%p217_p9)  ;;  %s243_s20 = sand.u32 (!%p217_p9), 1, %s1556_s22   ;;  %vm543_vm4 = vcmask (!%p217_p9), 261120   ;;  %vm806_vm5 = vcmask (!%p217_p9), 523264  }
  0x10   : > { %1307 = vmatpush3.bf16.msra.mxu1 (!%p217_p9), %v476_v31  ;;  %s1226_s26 = sshll.u32 (!%p217_p9), %s243_s20, 6  ;;  %vm1096_vm6 = vcmask (!%p217_p9), 785664   ;;  %vm1137_vm7 = vcmask (!%p217_p9), 1048320   ;;  %s1271_s13 = sshll.u32 (!%p217_p9), %s1628_s25, 10 }
  0x11   : > { %s1690_s9 = scalar_lea.vmem (!%p217_p9), [#allocation2], %s1226_s26  ;;  %s1919_s17 = scalar_lea.hbm (!%p217_p9), %s1974_s6, %s1271_s13 }
  0x12   : > { %s1160_s14 = sshll.u32 (!%p217_p9), %s1690_s9, 4  ;;  %s1927_s18 = scalar_lea.sflag (!%p217_p9), [#allocation3], %s243_s20  ;;  %s1921_s14 = int_to_ptr.vmem [resolvable:$true] %s1160_s14 }
  0x13   : > { %s1502_s25 = scalar_lea.vmem (!%p217_p9), %s1921_s14, 1024  ;;  %s1569_s19 = smov (!%p217_p9), [#allocation2]  }
  0x14   : > { %p1503_p11 = scmp.ne.s32.totalorder (!%p217_p9), %s1921_s14, %s1502_s25  ;;  %s1506_s26 = sshll.u32 (!%p217_p9), %s1569_s19, 4  ;;  %s1507_s26 = int_to_ptr.vmem [resolvable:$false] %s1506_s26 }
  0x15   : > { %s1982_s11 = smov (!%p247_p10, %s1227_s11), 63  ;;  %s1508_s28 = scalar_lea.vmem %s1507_s26, 2048 }
  0x16   : > { %s1228_s12 = sshll.u32 %s1982_s11, 2  ;;  %s1567_s11 = smov 32  }
  0x17   : > { %s250_s15 = scalar_lea.vmem %s1968_s0, %s1228_s12  ;;  %s1568_s12 = smov 96  }
  0x18   : > { %v257_v2 = vld [vmem:[%s250_s15] sm:$0xff]   ;;  %v259_v3 = vld [vmem:[%s250_s15 + $0x8] sm:$0xff]   ;;  %v261_v4 = vld [vmem:[%s250_s15 + $0x10] sm:$0xff]   ;;  %p1504_p12 = pnand %p1503_p11, %p1645_p5  ;;  %p1509_p0 = scmp.lt.s32.totalorder %s1921_s14, %s1507_s26 }
  0x19   : > { %v267_v5 = vunpack.c.l.bf16 %v259_v3  ;;  %v265_v6 = vunpack.c.l.bf16 %v257_v2  ;;  %v268_v7 = vunpack.c.h.bf16 %v259_v3  ;;  %v266_v8 = vunpack.c.h.bf16 %v257_v2  ;;  %1298 = vmatprep.mubr.msk.bf16.mxu0 %vm281_vm1, %v257_v2  ;;  %v263_v15 = vld [vmem:[%s250_s15 + $0x18] sm:$0xff]   ;;  %p1510_p1 = scmp.lt.s32.totalorder %s1508_s28, %s1502_s25 }
  0x1a   : > { %v270_v10 = vunpack.c.h.bf16 %v261_v4  ;;  %1299 = vmatmul.mubr.msk.bf16.vlgmr.msra.gmra.mrb[0].mxu0 %vm281_vm1, %v259_v3  ;;  %v269_v14 = vunpack.c.l.bf16 %v261_v4  ;;  %v272_v20 = vunpack.c.h.bf16 %v263_v15  ;;  %v271_v23 = vunpack.c.l.bf16 %v263_v15  ;;  %p1505_p13 = pneg %p1504_p12 }
  0x1b   : > { %v275_v9 = vmul.f32 %v267_v5, %v267_v5  ;;  %v273_v11 = vmul.f32 %v265_v6, %v265_v6  ;;  %v276_v12 = vmul.f32 %v268_v7, %v268_v7  ;;  %v274_v13 = vmul.f32 %v266_v8, %v266_v8  ;;  %1302 = vmatprep.mubr.msk.bf16.mxu0 %vm281_vm1, %v261_v4  ;;  %p1511_p2 = por %p1510_p1, %p1509_p0 }
  0x1c   : > { %v278_v19 = vmul.f32 %v270_v10, %v270_v10  ;;  %v277_v22 = vmul.f32 %v269_v14, %v269_v14  ;;  %v280_v25 = vmul.f32 %v272_v20, %v272_v20  ;;  %v279_v27 = vmul.f32 %v271_v23, %v271_v23 }
  0x1d   : > { %v288_v16 = vsel %vm281_vm1, %v275_v9, 0.0  ;;  %v282_v17 = vsel %vm281_vm1, %v273_v11, 0.0  ;;  %v291_v18 = vsel %vm281_vm1, %v276_v12, 0.0  ;;  %v285_v21 = vsel %vm281_vm1, %v274_v13, 0.0  ;;  %p1512_p3 = pnand %p1511_p2, %p1505_p13 }
  0x1e   : > { %289 = vadd.xlane.f32.xlu1 %v288_v16  ;;  %283 = vadd.xlane.f32.xlu0 %v282_v17  ;;  %v297_v24 = vsel %vm281_vm1, %v278_v19, 0.0  ;;  %v294_v26 = vsel %vm281_vm1, %v277_v22, 0.0  ;;  %v303_v28 = vsel %vm281_vm1, %v280_v25, 0.0  ;;  %v300_v29 = vsel %vm281_vm1, %v279_v27, 0.0 }
  0x22   : > { %292 = vadd.xlane.f32.xlu1 %v291_v18  ;;  %286 = vadd.xlane.f32.xlu0 %v285_v21 }
  0x23   : > { %1303 = vmatmul.mubr.msk.bf16.gmra.mrb[4].mxu0 %vm281_vm1, %v263_v15 }
  0x26   : > { %298 = vadd.xlane.f32.xlu1 %v297_v24  ;;  %295 = vadd.xlane.f32.xlu0 %v294_v26 }
  0x2a   : > { %304 = vadd.xlane.f32.xlu1 %v303_v28  ;;  %301 = vadd.xlane.f32.xlu0 %v300_v29  ;;  %v1238_v29 = vld [vmem:[%s1973_s5 + $0x1] ss:$0 sm:$0xff] }
  0xab   : > { %v284_v32 = vpop.xlane.xlu0 %283  ;;  %v290_v33 = vpop.xlane.xlu1 %289 }
  0xac   : > { %v308_v37 = vmax.f32 %v290_v33, 1e-24  ;;  %v306_v38 = vmax.f32 %v284_v32, 1e-24 }
  0xae   : > { %1406 = vrsqrt.f32 %v308_v37 }
  0xaf   : > { %v287_v34 = vpop.xlane.xlu0 %286  ;;  %v293_v35 = vpop.xlane.xlu1 %292  ;;  %1408 = vrsqrt.f32 %v306_v38 }
  0xb0   : > { %v309_v40 = vmax.f32 %v293_v35, 1e-24  ;;  %v307_v41 = vmax.f32 %v287_v34, 1e-24 }
  0xb2   : > { %1410 = vrsqrt.f32 %v309_v40 }
  0xb3   : > { %v296_v36 = vpop.xlane.xlu0 %295  ;;  %v299_v39 = vpop.xlane.xlu1 %298  ;;  %1412 = vrsqrt.f32 %v307_v41 }
  0xb4   : > { %v310_v45 = vmax.f32 %v296_v36, 1e-24  ;;  %v311_v47 = vmax.f32 %v299_v39, 1e-24 }
  0xb7   : > { %v302_v42 = vpop.xlane.xlu0 %301  ;;  %v305_v43 = vpop.xlane.xlu1 %304 }
  0xb8   : > { %v312_v44 = vmax.f32 %v302_v42, 1e-24  ;;  %v313_v46 = vmax.f32 %v305_v43, 1e-24  ;;  %v1407_v48 = vpop.eup %1406 }
  0xb9   : > { %v1409_v49 = vpop.eup %1408 }
  0xba   : > { %1414 = vrsqrt.f32 %v312_v44 }
  0xbb   : > { %1416 = vrsqrt.f32 %v310_v45 }
  0xbc   : > { %1418 = vrsqrt.f32 %v313_v46  ;;  %v1411_v50 = vpop.eup %1410 }
  0xbd   : > { %1420 = vrsqrt.f32 %v311_v47  ;;  %v1413_v53 = vpop.eup %1412 }
  0xc4   : > { %v1415_v0 = vpop.eup %1414 }
  0xc5   : > { %v1417_v2 = vpop.eup %1416 }
  0xc6   : > { %v1419_v5 = vpop.eup %1418 }
  0xc7   : > { %v1421_v9 = vpop.eup %1420 }
  0xed   : > { %v1300_v52 = vpop.f32.mrb[0].mxu0 }
  0xee   : > { %v426_v54 = vmul.f32 %v1407_v48, %v1300_v52  ;;  %v393_v55 = vpop.f32.mrb[1].mxu0 }
  0xef   : > { %v424_v56 = vmul.f32 %v1409_v49, %v393_v55  ;;  %v1301_v57 = vpop.f32.mrb[2].mxu0 }
  0xf0   : > { %v438_v58 = vadd.f32 %v1237_v51, %v426_v54  ;;  %v427_v59 = vmul.f32 %v1411_v50, %v1301_v57  ;;  %v396_v60 = vpop.f32.mrb[3].mxu0 }
  0xf1   : > { %v436_v61 = vadd.f32 %v1237_v51, %v424_v56  ;;  %v425_v62 = vmul.f32 %v1413_v53, %v396_v60 }
  0xf2   : > { %v439_v63 = vadd.f32 %v1237_v51, %v427_v59  ;;  %v446_v3 = vmax.f32 %v438_v58, 0.0 }
  0xf3   : > { %v437_v1 = vadd.f32 %v1237_v51, %v425_v62  ;;  %v444_v6 = vmax.f32 %v436_v61, 0.0 }
  0xf4   : > { %v447_v4 = vmax.f32 %v439_v63, 0.0 }
  0xf5   : > { %v445_v7 = vmax.f32 %v437_v1, 0.0 }
  0xf6   : > { %v1304_v8 = vpop.f32.mrb[4].mxu0  ;;  %v453_v10 = vpack.c.bf16 %v447_v4, %v446_v3 }
  0xf7   : > { %v430_v11 = vmul.f32 %v1415_v0, %v1304_v8  ;;  %v409_v12 = vpop.f32.mrb[5].mxu0  ;;  %v452_v15 = vpack.c.bf16 %v445_v7, %v444_v6 }
  0xf8   : > { %v428_v13 = vmul.f32 %v1417_v2, %v409_v12  ;;  %v1305_v14 = vpop.f32.mrb[6].mxu0 }
  0xf9   : > { %v442_v16 = vadd.f32 %v1237_v51, %v430_v11  ;;  %v431_v17 = vmul.f32 %v1419_v5, %v1305_v14  ;;  %v412_v18 = vpop.f32.mrb[7].mxu0  ;;  %1308 = vmatprep.mubr.msk.bf16.mxu1 %vm461_vm3, %v452_v15 }
  0xfa   : > { %v440_v19 = vadd.f32 %v1237_v51, %v428_v13  ;;  %v429_v20 = vmul.f32 %v1421_v9, %v412_v18  ;;  %1309 = vmatmul.mubr.msk.bf16.vlgmr.msra.gmra.mrb[0].mxu1 %vm461_vm3, %v453_v10 }
  0xfb   : > { %v450_v21 = vmax.f32 %v442_v16, 0.0  ;;  %v443_v22 = vadd.f32 %v1237_v51, %v431_v17 }
  0xfc   : > { %v448_v23 = vmax.f32 %v440_v19, 0.0  ;;  %v441_v24 = vadd.f32 %v1237_v51, %v429_v20 }
  0xfd   : > { %v451_v25 = vmax.f32 %v443_v22, 0.0 }
  0xfe   : > { %v449_v26 = vmax.f32 %v441_v24, 0.0 }
  0xff   : > { %v455_v27 = vpack.c.bf16 %v451_v25, %v450_v21 }
 0x100   : > { %v454_v28 = vpack.c.bf16 %v449_v26, %v448_v23 }
 0x102   : > { %1312 = vmatprep.mubr.msk.bf16.mxu1 %vm461_vm3, %v454_v28 }
 0x103   : > { %1313 = vmatmul.mubr.msk.bf16.gmra.mrb[4].mxu1 %vm461_vm3, %v455_v27 }
 0x1cd   : > { %v1310_v30 = vpop.f32.mrb[0].mxu1 }
 0x1ce   : > { %v521_v31 = vadd.f32 %v1310_v30, %v1238_v29  ;;  %v512_v32 = vpop.f32.mrb[1].mxu1  ;;  %v1396_v30 = vld [vmem:[%s1971_s3] sm:$0xff]  }
 0x1cf   : > { %v513_v33 = vadd.f32 %v1238_v29, %v512_v32  ;;  %v1311_v34 = vpop.f32.mrb[2].mxu1  ;;  %1316 = vmatprep.subr.bf16.mxu0 %v1396_v30 }
 0x1d0   : > { %1058 = vst.msk [vmem:[%s1690_s9 + $0x10] sm:$0xff] %vm543_vm4, %v521_v31  ;;  %v524_v35 = vadd.f32 %v1311_v34, %v1238_v29  ;;  %v515_v36 = vpop.f32.mrb[3].mxu1  ;;  %v550_v41 = vsel %vm543_vm4, %v521_v31, 0.0  ;;  %1317 = vmatpush3.bf16.msra.mxu0 %v1396_v30 }
 0x1d1   : > { %1056 = vst.msk [vmem:[%s1690_s9] sm:$0xff] %vm543_vm4, %v513_v33  ;;  %v516_v37 = vadd.f32 %v1238_v29, %v515_v36  ;;  %v544_v38 = vsel %vm543_vm4, %v513_v33, 0.0 }
 0x1d2   : > { %1059 = vst.msk [vmem:[%s1690_s9 + $0x18] sm:$0xff] %vm543_vm4, %v524_v35  ;;  %545 = vadd.xlane.f32.xlu0 %v544_v38  ;;  %v553_v46 = vsel %vm543_vm4, %v524_v35, 0.0 }
 0x1d3   : > { %1057 = vst.msk [vmem:[%s1690_s9 + $0x8] sm:$0xff] %vm543_vm4, %v516_v37  ;;  %v547_v39 = vsel %vm543_vm4, %v516_v37, 0.0 }
 0x1d4   : > { %548 = vadd.xlane.f32.xlu1 %v547_v39 }
 0x1d6   : > { %v1314_v40 = vpop.f32.mrb[4].mxu1  ;;  %551 = vadd.xlane.f32.xlu0 %v550_v41 }
 0x1d7   : > { %v537_v42 = vadd.f32 %v1314_v40, %v1238_v29  ;;  %v528_v43 = vpop.f32.mrb[5].mxu1 }
 0x1d8   : > { %v529_v44 = vadd.f32 %v1238_v29, %v528_v43  ;;  %v1315_v45 = vpop.f32.mrb[6].mxu1  ;;  %554 = vadd.xlane.f32.xlu1 %v553_v46 }
 0x1d9   : > { %1062 = vst.msk [vmem:[%s1690_s9 + $0x30] sm:$0xff] %vm543_vm4, %v537_v42  ;;  %v540_v47 = vadd.f32 %v1315_v45, %v1238_v29  ;;  %v531_v48 = vpop.f32.mrb[7].mxu1  ;;  %v562_v52 = vsel %vm543_vm4, %v537_v42, 0.0 }
 0x1da   : > { %1060 = vst.msk [vmem:[%s1690_s9 + $0x20] sm:$0xff] %vm543_vm4, %v529_v44  ;;  %v532_v49 = vadd.f32 %v1238_v29, %v531_v48  ;;  %v556_v50 = vsel %vm543_vm4, %v529_v44, 0.0 }
 0x1db   : > { %1063 = vst.msk [vmem:[%s1690_s9 + $0x38] sm:$0xff] %vm543_vm4, %v540_v47  ;;  %557 = vadd.xlane.f32.xlu0 %v556_v50  ;;  %v565_v53 = vsel %vm543_vm4, %v540_v47, 0.0 }
 0x1dc   : > { %1061 = vst.msk [vmem:[%s1690_s9 + $0x28] sm:$0xff] %vm543_vm4, %v532_v49  ;;  %v559_v51 = vsel %vm543_vm4, %v532_v49, 0.0 }
 0x1dd   : > { %560 = vadd.xlane.f32.xlu1 %v559_v51 }
 0x1df   : > { %563 = vadd.xlane.f32.xlu0 %v562_v52 }
 0x1e1   : > { %566 = vadd.xlane.f32.xlu1 %v565_v53 }
 0x25f   : > { %v546_v54 = vpop.xlane.xlu0 %545 }
 0x260   : > { %v569_v55 = vmul.f32 0.03125, %v546_v54 }
 0x261   : > { %v549_v56 = vpop.xlane.xlu1 %548 }
 0x262   : > { %v1716_v57 = vsub.f32 %v513_v33, %v569_v55  ;;  %v570_v58 = vmul.f32 0.03125, %v549_v56 }
 0x263   : > { %v552_v59 = vpop.xlane.xlu0 %551 }
 0x264   : > { %v1718_v60 = vsub.f32 %v516_v37, %v570_v58  ;;  %v571_v61 = vmul.f32 0.03125, %v552_v59  ;;  %v585_v62 = vmul.f32 %v1716_v57, %v1716_v57 }
 0x265   : > { %v555_v63 = vpop.xlane.xlu1 %554 }
 0x266   : > { %v1722_v0 = vsub.f32 %v521_v31, %v571_v61  ;;  %v572_v1 = vmul.f32 0.03125, %v555_v63  ;;  %v593_v2 = vsel %vm543_vm4, %v585_v62, 0.0  ;;  %v586_v3 = vmul.f32 %v1718_v60, %v1718_v60  ;;  %v1397_v31 = vld [vmem:[%s1971_s3 + $0x8] sm:$0xff]  }
 0x267   : > { %594 = vadd.xlane.f32.xlu0 %v593_v2  ;;  %1318 = vmatprep.subr.bf16.mxu0 %v1397_v31 }
 0x268   : > { %v558_v4 = vpop.xlane.xlu0 %557  ;;  %v1727_v5 = vsub.f32 %v524_v35, %v572_v1  ;;  %v596_v7 = vsel %vm543_vm4, %v586_v3, 0.0  ;;  %v587_v8 = vmul.f32 %v1722_v0, %v1722_v0  ;;  %1319 = vmatpush3.bf16.msra.mxu0 %v1397_v31 }
 0x269   : > { %v573_v6 = vmul.f32 0.03125, %v558_v4  ;;  %597 = vadd.xlane.f32.xlu1 %v596_v7 }
 0x26a   : > { %v561_v9 = vpop.xlane.xlu1 %560  ;;  %v599_v12 = vsel %vm543_vm4, %v587_v8, 0.0  ;;  %v588_v13 = vmul.f32 %v1727_v5, %v1727_v5 }
 0x26b   : > { %v1732_v10 = vsub.f32 %v529_v44, %v573_v6  ;;  %v574_v11 = vmul.f32 0.03125, %v561_v9  ;;  %600 = vadd.xlane.f32.xlu0 %v599_v12  ;;  %v1249_v6 = vld [vmem:[%s1973_s5 + $0x2] ss:$0 sm:$0xff] }
 0x26c   : > { %v564_v14 = vpop.xlane.xlu0 %563  ;;  %v602_v17 = vsel %vm543_vm4, %v588_v13, 0.0 }
 0x26d   : > { %v1737_v15 = vsub.f32 %v532_v49, %v574_v11  ;;  %v575_v16 = vmul.f32 0.03125, %v564_v14  ;;  %v589_v18 = vmul.f32 %v1732_v10, %v1732_v10  ;;  %603 = vadd.xlane.f32.xlu1 %v602_v17 }
 0x26e   : > { %v567_v19 = vpop.xlane.xlu1 %566 }
 0x26f   : > { %v1742_v20 = vsub.f32 %v537_v42, %v575_v16  ;;  %v576_v21 = vmul.f32 0.03125, %v567_v19  ;;  %v605_v22 = vsel %vm543_vm4, %v589_v18, 0.0  ;;  %v590_v23 = vmul.f32 %v1737_v15, %v1737_v15 }
 0x270   : > { %606 = vadd.xlane.f32.xlu0 %v605_v22 }
 0x271   : > { %v584_v24 = vsub.f32 %v540_v47, %v576_v21  ;;  %v608_v25 = vsel %vm543_vm4, %v590_v23, 0.0  ;;  %v591_v26 = vmul.f32 %v1742_v20, %v1742_v20 }
 0x272   : > { %609 = vadd.xlane.f32.xlu1 %v608_v25 }
 0x273   : > { %v611_v27 = vsel %vm543_vm4, %v591_v26, 0.0  ;;  %v592_v28 = vmul.f32 %v584_v24, %v584_v24 }
 0x274   : > { %612 = vadd.xlane.f32.xlu0 %v611_v27 }
 0x275   : > { %v614_v29 = vsel %vm543_vm4, %v592_v28, 0.0 }
 0x276   : > { %615 = vadd.xlane.f32.xlu1 %v614_v29 }
 0x2f4   : > { %v595_v32 = vpop.xlane.xlu0 %594 }
 0x2f5   : > { %v625_v33 = vmax.f32 %v595_v32, 1e-24 }
 0x2f6   : > { %v598_v34 = vpop.xlane.xlu1 %597 }
 0x2f7   : > { %1422 = vrsqrt.f32 %v625_v33  ;;  %v626_v35 = vmax.f32 %v598_v34, 1e-24  ;;  %v618_v8 = vmul.f32 0.032258064, %v598_v34 }
 0x2f8   : > { %v601_v36 = vpop.xlane.xlu0 %600 }
 0x2f9   : > { %1424 = vrsqrt.f32 %v626_v35  ;;  %v627_v37 = vmax.f32 %v601_v36, 1e-24  ;;  %v619_v4 = vmul.f32 0.032258064, %v601_v36  ;;  %v751_v12 = vsub.f32 %v618_v8, %v1249_v6 }
 0x2fa   : > { %v604_v38 = vpop.xlane.xlu1 %603 }
 0x2fb   : > { %1426 = vrsqrt.f32 %v627_v37  ;;  %v628_v39 = vmax.f32 %v604_v38, 1e-24  ;;  %v620_v7 = vmul.f32 0.032258064, %v604_v38  ;;  %v752_v9 = vsub.f32 %v619_v4, %v1249_v6 }
 0x2fc   : > { %v759_v17 = vand.u32 2147483647, %v751_v12 }
 0x2fd   : > { %v607_v40 = vpop.xlane.xlu0 %606  ;;  %1428 = vrsqrt.f32 %v628_v39  ;;  %v753_v11 = vsub.f32 %v620_v7, %v1249_v6  ;;  %v760_v13 = vand.u32 2147483647, %v752_v9 }
 0x2fe   : > { %v629_v41 = vmax.f32 %v607_v40, 1e-24  ;;  %v621_v18 = vmul.f32 0.032258064, %v607_v40  ;;  %v767_v25 = vadd.f32 1.0, %v759_v17 }
 0x2ff   : > { %v610_v42 = vpop.xlane.xlu1 %609  ;;  %v768_v19 = vadd.f32 1.0, %v760_v13 }
 0x300   : > { %1430 = vrsqrt.f32 %v629_v41  ;;  %v630_v43 = vmax.f32 %v610_v42, 1e-24  ;;  %v622_v22 = vmul.f32 0.032258064, %v610_v42  ;;  %v754_v26 = vsub.f32 %v621_v18, %v1249_v6 }
 0x301   : > { %v613_v44 = vpop.xlane.xlu0 %612  ;;  %v1423_v45 = vpop.eup %1422 }
 0x302   : > { %1432 = vrsqrt.f32 %v630_v43  ;;  %v631_v46 = vmax.f32 %v613_v44, 1e-24  ;;  %v641_v50 = vmul.f32 %v1423_v45, %v1716_v57  ;;  %v623_v16 = vmul.f32 0.032258064, %v613_v44 }
 0x303   : > { %v616_v47 = vpop.xlane.xlu1 %615  ;;  %v1425_v48 = vpop.eup %1424  ;;  %v755_v28 = vsub.f32 %v622_v22, %v1249_v6  ;;  %v762_v30 = vand.u32 2147483647, %v754_v26  ;;  %v1399_v22 = vld [vmem:[%s1972_s4 + $0x8] sm:$0xff]  }
 0x304   : > { %v632_v49 = vmax.f32 %v616_v47, 1e-24  ;;  %v642_v51 = vmul.f32 %v1425_v48, %v1718_v60  ;;  %1434 = vrsqrt.f32 %v631_v46 }
 0x305   : > { %v1427_v52 = vpop.eup %1426  ;;  %v770_v34 = vadd.f32 1.0, %v762_v30 }
 0x306   : > { %v649_v53 = vpack.c.bf16 %v642_v51, %v641_v50  ;;  %1436 = vrsqrt.f32 %v632_v49  ;;  %v643_v55 = vmul.f32 %v1427_v52, %v1722_v0 }
 0x307   : > { %v1429_v54 = vpop.eup %1428  ;;  %1438 = vrcp.f32 %v768_v19 }
 0x308   : > { %1320 = vmatprep.mubr.msk.bf16.mxu0 %vm543_vm4, %v649_v53  ;;  %v644_v56 = vmul.f32 %v1429_v54, %v1727_v5  ;;  %v617_v5 = vmul.f32 0.032258064, %v595_v32  ;;  %v763_v32 = vand.u32 2147483647, %v755_v28 }
 0x30a   : > { %v1431_v58 = vpop.eup %1430  ;;  %v650_v59 = vpack.c.bf16 %v644_v56, %v643_v55  ;;  %v771_v36 = vadd.f32 1.0, %v763_v32 }
 0x30b   : > { %v645_v57 = vmul.f32 %v1431_v58, %v1732_v10  ;;  %v750_v10 = vsub.f32 %v617_v5, %v1249_v6 }
 0x30c   : > { %v1433_v61 = vpop.eup %1432  ;;  %1321 = vmatmul.mubr.msk.bf16.vlgmr.msra.gmra.mrb[8].mxu0 %vm543_vm4, %v650_v59 }
 0x30d   : > { %v646_v60 = vmul.f32 %v1433_v61, %v1737_v15  ;;  %v758_v14 = vand.u32 2147483647, %v750_v10  ;;  %v761_v15 = vand.u32 2147483647, %v753_v11 }
 0x30e   : > { %v1435_v63 = vpop.eup %1434 }
 0x30f   : > { %v651_v62 = vpack.c.bf16 %v646_v60, %v645_v57  ;;  %v647_v2 = vmul.f32 %v1435_v63, %v1742_v20  ;;  %v624_v20 = vmul.f32 0.032258064, %v616_v47  ;;  %v766_v21 = vadd.f32 1.0, %v758_v14 }
 0x310   : > { %v1437_v1 = vpop.eup %1436  ;;  %v769_v23 = vadd.f32 1.0, %v761_v15 }
 0x311   : > { %1324 = vmatprep.mubr.msk.bf16.mxu0 %vm543_vm4, %v651_v62  ;;  %v648_v3 = vmul.f32 %v1437_v1, %v584_v24  ;;  %v756_v24 = vsub.f32 %v623_v16, %v1249_v6  ;;  %v757_v27 = vsub.f32 %v624_v20, %v1249_v6  ;;  %1440 = vrcp.f32 %v766_v21  ;;  %v1439_v37 = vpop.eup %1438  ;;  %v1398_v21 = vld [vmem:[%s1972_s4] sm:$0xff]  }
 0x312   : > { %1442 = vrcp.f32 %v769_v23  ;;  %1328 = vmatprep.subr.bf16.mxu1 %v1398_v21  ;;  %v1400_v23 = vld [vmem:[%s1972_s4 + $0x10] sm:$0xff]  }
 0x313   : > { %v652_v0 = vpack.c.bf16 %v648_v3, %v647_v2  ;;  %v764_v29 = vand.u32 2147483647, %v756_v24  ;;  %1444 = vrcp.f32 %v767_v25  ;;  %v765_v31 = vand.u32 2147483647, %v757_v27  ;;  %1329 = vmatpush3.bf16.msra.mxu1 %v1398_v21  ;;  %v1401_v24 = vld [vmem:[%s1972_s4 + $0x18] sm:$0xff]  }
 0x314   : > { %1330 = vmatprep.subr.bf16.mxu1 %v1399_v22 }
 0x315   : > { %1325 = vmatmul.mubr.msk.bf16.gmra.mrb[12].mxu0 %vm543_vm4, %v652_v0  ;;  %v772_v33 = vadd.f32 1.0, %v764_v29  ;;  %v773_v35 = vadd.f32 1.0, %v765_v31 }
 0x317   : > { %1446 = vrcp.f32 %v772_v33  ;;  %1331 = vmatpush3.bf16.msra.mxu1 %v1399_v22 }
 0x318   : > { %1448 = vrcp.f32 %v770_v34  ;;  %1332 = vmatprep.subr.bf16.mxu1 %v1400_v23 }
 0x319   : > { %1450 = vrcp.f32 %v773_v35 }
 0x31a   : > { %1452 = vrcp.f32 %v771_v36 }
 0x31b   : > { %v1441_v39 = vpop.eup %1440  ;;  %1333 = vmatpush3.bf16.msra.mxu1 %v1400_v23 }
 0x31c   : > { %v1443_v42 = vpop.eup %1442  ;;  %1334 = vmatprep.subr.bf16.mxu1 %v1401_v24 }
 0x31d   : > { %v1445_v45 = vpop.eup %1444 }
 0x31f   : > { %1335 = vmatpush3.bf16.msra.mxu1 %v1401_v24 }
 0x321   : > { %v1447_v53 = vpop.eup %1446 }
 0x322   : > { %v1449_v55 = vpop.eup %1448 }
 0x323   : > { %v1451_v59 = vpop.eup %1450 }
 0x324   : > { %v1453_v60 = vpop.eup %1452 }
 0x3df   : > { %v1322_v38 = vpop.f32.mrb[8].mxu0 }
 0x3e0   : > { %v784_v40 = vmul.f32 %v1439_v37, %v1322_v38  ;;  %v715_v41 = vpop.f32.mrb[9].mxu0 }
 0x3e1   : > { %v782_v43 = vmul.f32 %v1441_v39, %v715_v41  ;;  %v1323_v44 = vpop.f32.mrb[10].mxu0 }
 0x3e2   : > { %v794_v46 = vmul.f32 1.442695, %v784_v40  ;;  %v785_v47 = vmul.f32 %v1443_v42, %v1323_v44  ;;  %v718_v48 = vpop.f32.mrb[11].mxu0 }
 0x3e3   : > { %v790_v49 = vmul.f32 1.442695, %v782_v43  ;;  %v783_v50 = vmul.f32 %v1445_v45, %v718_v48 }
 0x3e4   : > { %v796_v51 = vmul.f32 1.442695, %v785_v47 }
 0x3e5   : > { %1454 = vpow2.f32 %v790_v49  ;;  %v792_v52 = vmul.f32 1.442695, %v783_v50 }
 0x3e6   : > { %1456 = vpow2.f32 %v794_v46 }
 0x3e7   : > { %1458 = vpow2.f32 %v792_v52 }
 0x3e8   : > { %1460 = vpow2.f32 %v796_v51  ;;  %v1326_v54 = vpop.f32.mrb[12].mxu0 }
 0x3e9   : > { %v788_v56 = vmul.f32 %v1447_v53, %v1326_v54  ;;  %v731_v58 = vpop.f32.mrb[13].mxu0 }
 0x3ea   : > { %v786_v61 = vmul.f32 %v1449_v55, %v731_v58  ;;  %v1327_v57 = vpop.f32.mrb[14].mxu0 }
 0x3eb   : > { %v802_v62 = vmul.f32 1.442695, %v788_v56  ;;  %v789_v63 = vmul.f32 %v1451_v59, %v1327_v57  ;;  %v734_v1 = vpop.f32.mrb[15].mxu0 }
 0x3ec   : > { %v798_v2 = vmul.f32 1.442695, %v786_v61  ;;  %v787_v3 = vmul.f32 %v1453_v60, %v734_v1 }
 0x3ed   : > { %v804_v4 = vmul.f32 1.442695, %v789_v63 }
 0x3ee   : > { %1462 = vpow2.f32 %v798_v2  ;;  %v800_v5 = vmul.f32 1.442695, %v787_v3 }
 0x3ef   : > { %v1455_v0 = vpop.eup %1454  ;;  %1464 = vpow2.f32 %v802_v62 }
 0x3f0   : > { %v1457_v6 = vpop.eup %1456  ;;  %v807_v7 = vsel %vm806_vm5, %v1455_v0, 0.0  ;;  %1466 = vpow2.f32 %v800_v5  ;;  %v1566_v5 = vmov 32  }
 0x3f1   : > { %v1459_v8 = vpop.eup %1458  ;;  %808 = vadd.xlane.f32.xlu0 %v807_v7  ;;  %1468 = vpow2.f32 %v804_v4  ;;  %v813_v11 = vsel %vm806_vm5, %v1457_v6, 0.0  ;;  %1391 = vset.pattern.permute.xlu1 %v1566_v5 }
 0x3f2   : > { %v810_v9 = vsel %vm806_vm5, %v1459_v8, 0.0  ;;  %v1461_v10 = vpop.eup %1460  ;;  %1390 = vset.pattern.permute.xlu0 %v1566_v5 }
 0x3f3   : > { %811 = vadd.xlane.f32.xlu1 %v810_v9  ;;  %v816_v12 = vsel %vm806_vm5, %v1461_v10, 0.0 }
 0x3f5   : > { %814 = vadd.xlane.f32.xlu0 %v813_v11 }
 0x3f7   : > { %817 = vadd.xlane.f32.xlu1 %v816_v12 }
 0x3f8   : > { %v1463_v13 = vpop.eup %1462 }
 0x3f9   : > { %v1776_v14 = vpop.eup %1464  ;;  %v819_v15 = vsel %vm806_vm5, %v1463_v13, 0.0 }
 0x3fa   : > { %v1467_v16 = vpop.eup %1466  ;;  %820 = vadd.xlane.f32.xlu0 %v819_v15  ;;  %v825_v19 = vsel %vm806_vm5, %v1776_v14, 0.0 }
 0x3fb   : > { %v822_v17 = vsel %vm806_vm5, %v1467_v16, 0.0  ;;  %v1780_v18 = vpop.eup %1468 }
 0x3fc   : > { %823 = vadd.xlane.f32.xlu1 %v822_v17  ;;  %v828_v20 = vsel %vm806_vm5, %v1780_v18, 0.0 }
 0x3fe   : > { %826 = vadd.xlane.f32.xlu0 %v825_v19 }
 0x400   : > { %829 = vadd.xlane.f32.xlu1 %v828_v20 }
 0x47e   : > { %v809_v25 = vpop.xlane.xlu0 %808 }
 0x47f   : > { %1470 = vrcp.f32 %v809_v25 }
 0x480   : > { %v812_v26 = vpop.xlane.xlu1 %811 }
 0x481   : > { %1472 = vrcp.f32 %v812_v26 }
 0x482   : > { %v815_v27 = vpop.xlane.xlu0 %814 }
 0x483   : > { %1474 = vrcp.f32 %v815_v27 }
 0x484   : > { %v818_v28 = vpop.xlane.xlu1 %817 }
 0x485   : > { %1476 = vrcp.f32 %v818_v28 }
 0x487   : > { %v821_v29 = vpop.xlane.xlu0 %820 }
 0x488   : > { %1478 = vrcp.f32 %v821_v29 }
 0x489   : > { %v1471_v30 = vpop.eup %1470  ;;  %v824_v31 = vpop.xlane.xlu1 %823 }
 0x48a   : > { %v839_v32 = vmul.f32 %v1471_v30, %v1455_v0  ;;  %1480 = vrcp.f32 %v824_v31 }
 0x48b   : > { %v1473_v33 = vpop.eup %1472  ;;  %v827_v34 = vpop.xlane.xlu0 %826 }
 0x48c   : > { %v840_v35 = vmul.f32 %v1473_v33, %v1459_v8  ;;  %v1798_v36 = vadd.f32 -0.0025, %v839_v32  ;;  %1482 = vrcp.f32 %v827_v34 }
 0x48d   : > { %v1475_v37 = vpop.eup %1474  ;;  %v830_v39 = vpop.xlane.xlu1 %829 }
 0x48e   : > { %v841_v38 = vmul.f32 %v1475_v37, %v1457_v6  ;;  %v1800_v40 = vadd.f32 -0.0025, %v840_v35  ;;  %1484 = vrcp.f32 %v830_v39  ;;  %v855_v44 = vmax.f32 %v1798_v36, 0.0 }
 0x48f   : > { %v1477_v41 = vpop.eup %1476 }
 0x490   : > { %v1802_v42 = vadd.f32 -0.0025, %v841_v38  ;;  %v842_v43 = vmul.f32 %v1477_v41, %v1461_v10  ;;  %v856_v45 = vmax.f32 %v1800_v40, 0.0 }
 0x492   : > { %v1806_v46 = vadd.f32 -0.0025, %v842_v43  ;;  %v863_v47 = vpack.c.bf16 %v856_v45, %v855_v44  ;;  %v1479_v48 = vpop.eup %1478  ;;  %v857_v49 = vmax.f32 %v1802_v42, 0.0 }
 0x493   : > { %v843_v51 = vmul.f32 %v1479_v48, %v1463_v13 }
 0x494   : > { %v858_v50 = vmax.f32 %v1806_v46, 0.0  ;;  %1336 = vmatprep.mubr.msk.bf16.mxu1 %vm806_vm5, %v863_v47  ;;  %v1481_v52 = vpop.eup %1480 }
 0x495   : > { %v844_v54 = vmul.f32 %v1481_v52, %v1467_v16  ;;  %v1819_v55 = vadd.f32 -0.0025, %v843_v51 }
 0x496   : > { %v864_v53 = vpack.c.bf16 %v858_v50, %v857_v49  ;;  %v1483_v56 = vpop.eup %1482 }
 0x497   : > { %v1822_v58 = vadd.f32 -0.0025, %v844_v54  ;;  %v845_v59 = vmul.f32 %v1483_v56, %v1776_v14  ;;  %v859_v57 = vmax.f32 %v1819_v55, 0.0 }
 0x498   : > { %1337 = vmatmul.mubr.msk.bf16.vlgmr.msra.gmra.mrb[8].mxu1 %vm806_vm5, %v864_v53  ;;  %v1485_v61 = vpop.eup %1484 }
 0x499   : > { %v860_v60 = vmax.f32 %v1822_v58, 0.0  ;;  %v846_v62 = vmul.f32 %v1485_v61, %v1780_v18  ;;  %v1828_v63 = vadd.f32 -0.0025, %v845_v59 }
 0x49b   : > { %v865_v1 = vpack.c.bf16 %v860_v60, %v859_v57  ;;  %v1834_v2 = vadd.f32 -0.0025, %v846_v62  ;;  %v861_v3 = vmax.f32 %v1828_v63, 0.0 }
 0x49d   : > { %1340 = vmatprep.mubr.msk.bf16.mxu1 %vm806_vm5, %v865_v1  ;;  %v862_v0 = vmax.f32 %v1834_v2, 0.0 }
 0x49f   : > { %v866_v4 = vpack.c.bf16 %v862_v0, %v861_v3 }
 0x4a1   : > { %1341 = vmatmul.mubr.msk.bf16.gmra.mrb[12].mxu1 %vm806_vm5, %v866_v4 }
 0x56b   : > { %v1338_v6 = vpop.f32.mrb[8].mxu1 }
 0x56c   : > { %v978_v7 = vmax.f32 %v1338_v6, 1e-12  ;;  %v945_v8 = vpop.f32.mrb[9].mxu1 }
 0x56d   : > { %v976_v9 = vmax.f32 %v945_v8, 1e-12  ;;  %v1339_v10 = vpop.f32.mrb[10].mxu1 }
 0x56e   : > { %1486 = vrcp.f32 %v978_v7  ;;  %v979_v11 = vmax.f32 %v1339_v10, 1e-12  ;;  %v948_v12 = vpop.f32.mrb[11].mxu1 }
 0x56f   : > { %1488 = vrcp.f32 %v976_v9  ;;  %v977_v13 = vmax.f32 %v948_v12, 1e-12 }
 0x570   : > { %1490 = vrcp.f32 %v979_v11 }
 0x571   : > { %1492 = vrcp.f32 %v977_v13 }
 0x574   : > { %v1844_v14 = vpop.f32.mrb[12].mxu1 }
 0x575   : > { %v982_v15 = vmax.f32 %v1844_v14, 1e-12  ;;  %v961_v16 = vpop.f32.mrb[13].mxu1 }
 0x576   : > { %v1847_v17 = vpop.f32.mrb[14].mxu1  ;;  %v980_v21 = vmax.f32 %v961_v16, 1e-12 }
 0x577   : > { %v964_v19 = vpop.f32.mrb[15].mxu1  ;;  %1494 = vrcp.f32 %v982_v15  ;;  %v983_v25 = vmax.f32 %v1847_v17, 1e-12 }
 0x578   : > { %v1487_v18 = vpop.eup %1486  ;;  %1496 = vrcp.f32 %v980_v21  ;;  %v981_v23 = vmax.f32 %v964_v19, 1e-12 }
 0x579   : > { %v1489_v20 = vpop.eup %1488  ;;  %1012 = vperm.xlu1 %1391, %v1487_v18  }
 0x57a   : > { %1002 = vperm.xlu0 %1390, %v1489_v20   ;;  %v1491_v22 = vpop.eup %1490  ;;  %1498 = vrcp.f32 %v981_v23 }
 0x57b   : > { %v1493_v24 = vpop.eup %1492  ;;  %1500 = vrcp.f32 %v983_v25 }
 0x57d   : > { %1017 = vperm.xlu1 %1391, %v1491_v22  }
 0x581   : > { %1007 = vperm.xlu1 %1391, %v1493_v24   ;;  %v1495_v26 = vpop.eup %1494 }
 0x582   : > { %v1497_v27 = vpop.eup %1496 }
 0x584   : > { %v1499_v28 = vpop.eup %1498 }
 0x585   : > { %1032 = vperm.xlu1 %1391, %v1495_v26   ;;  %v1501_v29 = vpop.eup %1500 }
 0x589   : > { %1022 = vperm.xlu1 %1391, %v1497_v27  }
 0x58d   : > { %1027 = vperm.xlu1 %1391, %v1499_v28  }
 0x591   : > { %1037 = vperm.xlu1 %1391, %v1501_v29  }
 0x5f8   : > { %v1013_v30 = vpop.permute.xlu1 %1012 }
 0x5f9   : > { %v1042_v31 = vmul.f32 %v1013_v30, %v857_v49  ;;  %v1050_v33 = vmul.f32 %v1338_v6, %v1013_v30  ;;  %v1003_v35 = vpop.permute.xlu0 %1002 }
 0x5fa   : > { %v1040_v38 = vmul.f32 %v1003_v35, %v855_v44  ;;  %v1048_v42 = vmul.f32 %v1003_v35, %v945_v8 }
 0x5fb   : > { %1076 = vrot.lane.b32.xlu1 %v1042_v31, %s1567_s11 }
 0x5fc   : > { %v1018_v32 = vpop.permute.xlu1 %1017 }
 0x5fd   : > { %v1043_v34 = vmul.f32 %v1018_v32, %v858_v50  ;;  %v1051_v39 = vmul.f32 %v1339_v10, %v1018_v32 }
 0x5ff   : > { %1078 = vrot.lane.b32.xlu0 %v1043_v34, %s1567_s11  ;;  %1117 = vrot.lane.b32.xlu1 %v1050_v33, %s1568_s12 }
 0x600   : > { %v1008_v37 = vpop.permute.xlu1 %1007 }
 0x601   : > { %v1041_v43 = vmul.f32 %v1008_v37, %v856_v45  ;;  %v1049_v47 = vmul.f32 %v1008_v37, %v948_v12 }
 0x603   : > { %1119 = vrot.lane.b32.xlu0 %v1051_v39, %s1568_s12  ;;  %1072 = vrot.lane.b32.xlu1 %v1040_v38, %s1567_s11 }
 0x604   : > { %v1033_v41 = vpop.permute.xlu1 %1032 }
 0x605   : > { %v1046_v36 = vmul.f32 %v1033_v41, %v861_v3  ;;  %v1054_v50 = vmul.f32 %v1844_v14, %v1033_v41 }
 0x607   : > { %1074 = vrot.lane.b32.xlu0 %v1041_v43, %s1567_s11  ;;  %1113 = vrot.lane.b32.xlu1 %v1048_v42, %s1568_s12 }
 0x608   : > { %v1023_v46 = vpop.permute.xlu1 %1022 }
 0x609   : > { %v1044_v48 = vmul.f32 %v1023_v46, %v859_v57  ;;  %v1052_v45 = vmul.f32 %v1023_v46, %v961_v16 }
 0x60b   : > { %1115 = vrot.lane.b32.xlu0 %v1049_v47, %s1568_s12  ;;  %1084 = vrot.lane.b32.xlu1 %v1046_v36, %s1567_s11 }
 0x60c   : > { %v1028_v44 = vpop.permute.xlu1 %1027 }
 0x60d   : > { %v1045_v51 = vmul.f32 %v1028_v44, %v860_v60  ;;  %v1053_v52 = vmul.f32 %v1028_v44, %v964_v19 }
 0x60f   : > { %1080 = vrot.lane.b32.xlu1 %v1044_v48, %s1567_s11 }
 0x610   : > { %v1038_v40 = vpop.permute.xlu1 %1037 }
 0x611   : > { %v1047_v49 = vmul.f32 %v1038_v40, %v862_v0  ;;  %v1055_v53 = vmul.f32 %v1847_v17, %v1038_v40 }
 0x613   : > { %1086 = vrot.lane.b32.xlu0 %v1047_v49, %s1567_s11  ;;  %1121 = vrot.lane.b32.xlu1 %v1052_v45, %s1568_s12 }
 0x617   : > { %1082 = vrot.lane.b32.xlu0 %v1045_v51, %s1567_s11  ;;  %1125 = vrot.lane.b32.xlu1 %v1054_v50, %s1568_s12 }
 0x61b   : > { %1123 = vrot.lane.b32.xlu0 %v1053_v52, %s1568_s12 }
 0x61f   : > { %1127 = vrot.lane.b32.xlu0 %v1055_v53, %s1568_s12 }
 0x66d   : > { %v1077_v54 = vpop.permute.xlu1 %1076 }
 0x66e   : > { %1099 = vst.msk [vmem:[%s1690_s9 + $0x10] sm:$0xff] %vm1096_vm6, %v1077_v54 }
 0x671   : > { %v1118_v55 = vpop.permute.xlu1 %1117  ;;  %v1079_v56 = vpop.permute.xlu0 %1078 }
 0x672   : > { %1140 = vst.msk [vmem:[%s1690_s9 + $0x10] sm:$0xff] %vm1137_vm7, %v1118_v55 }
 0x673   : > { %1100 = vst.msk [vmem:[%s1690_s9 + $0x18] sm:$0xff] %vm1096_vm6, %v1079_v56 }
 0x675   : > { %v1073_v58 = vpop.permute.xlu1 %1072  ;;  %v1120_v59 = vpop.permute.xlu0 %1119 }
 0x676   : > { %1097 = vst.msk [vmem:[%s1690_s9] sm:$0xff] %vm1096_vm6, %v1073_v58 }
 0x677   : > { %1141 = vst.msk [vmem:[%s1690_s9 + $0x18] sm:$0xff] %vm1137_vm7, %v1120_v59 }
 0x679   : > { %v1114_v61 = vpop.permute.xlu1 %1113  ;;  %v1075_v57 = vpop.permute.xlu0 %1074 }
 0x67a   : > { %1138 = vst.msk [vmem:[%s1690_s9] sm:$0xff] %vm1137_vm7, %v1114_v61 }
 0x67b   : > { %1098 = vst.msk [vmem:[%s1690_s9 + $0x8] sm:$0xff] %vm1096_vm6, %v1075_v57 }
 0x67d   : > { %v1085_v60 = vpop.permute.xlu1 %1084  ;;  %v1116_v62 = vpop.permute.xlu0 %1115 }
 0x67e   : > { %1103 = vst.msk [vmem:[%s1690_s9 + $0x30] sm:$0xff] %vm1096_vm6, %v1085_v60 }
 0x67f   : > { %1139 = vst.msk [vmem:[%s1690_s9 + $0x8] sm:$0xff] %vm1137_vm7, %v1116_v62 }
 0x681   : > { %v1081_v63 = vpop.permute.xlu1 %1080 }
 0x682   : > { %1101 = vst.msk [vmem:[%s1690_s9 + $0x20] sm:$0xff] %vm1096_vm6, %v1081_v63 }
 0x685   : > { %v1122_v1 = vpop.permute.xlu1 %1121  ;;  %v1087_v2 = vpop.permute.xlu0 %1086 }
 0x686   : > { %1142 = vst.msk [vmem:[%s1690_s9 + $0x20] sm:$0xff] %vm1137_vm7, %v1122_v1 }
 0x687   : > { %1104 = vst.msk [vmem:[%s1690_s9 + $0x38] sm:$0xff] %vm1096_vm6, %v1087_v2 }
 0x689   : > { %v1126_v3 = vpop.permute.xlu1 %1125  ;;  %v1083_v0 = vpop.permute.xlu0 %1082 }
 0x68a   : > { %1144 = vst.msk [vmem:[%s1690_s9 + $0x30] sm:$0xff] %vm1137_vm7, %v1126_v3 }
 0x68b   : > { %1102 = vst.msk [vmem:[%s1690_s9 + $0x28] sm:$0xff] %vm1096_vm6, %v1083_v0 }
 0x68d   : > { %v1124_v4 = vpop.permute.xlu0 %1123 }
 0x68e   : > { %1143 = vst.msk [vmem:[%s1690_s9 + $0x28] sm:$0xff] %vm1137_vm7, %v1124_v4 }
 0x691   : > { %v1128_v5 = vpop.permute.xlu0 %1127 }
 0x692   : > { %1145 = vst.msk [vmem:[%s1690_s9 + $0x38] sm:$0xff] %vm1137_vm7, %v1128_v5 }
 0x693   : > { %1515 = shalt.err (!%p1512_p3)
}
 0x694   : > { %s1516_s20 = scalar_lea.hbm %s1919_s17, 1024  ;;  %s1520_s10 = scalar_lea.hbm %s1974_s6, 8192 }
 0x695   : > { %p1517_p4 = scmp.ne.s32.totalorder %s1919_s17, %s1516_s20  ;;  %p1521_p9 = scmp.lt.u32.totalorder %s1919_s17, %s1974_s6 }
 0x696   : > { %p1522_p10 = scmp.lt.u32.totalorder %s1520_s10, %s1516_s20  ;;  %p1524_p12 = scmp.lt.u32.totalorder %s1516_s20, %s1919_s17 }
 0x697   : > { %p1518_p7 = pnand %p1517_p4, %p1645_p5 }
 0x698   : > { %p1523_p11 = por %p1522_p10, %p1521_p9 }
 0x699   : > { %p1519_p8 = pneg %p1518_p7 }
 0x69a   : > { %p1525_p13 = por %p1524_p12, %p1523_p11 }
 0x69c   : > { %p1526_p0 = pnand %p1525_p13, %p1519_p8 }
 0x69e   : > { %1529 = shalt.err (!%p1526_p0)
}
 0x69f   : > { %s1570_s13 = smov 128   ;;  %s1571_s15 = smov 8  }
 0x6a0   : > { %1346 = dma.vmem_to_hbm [thread:$0]  (%p1645_p5), %s1921_s14, 1024, %s1919_s17, %s1927_s18, %s1570_s13, %s1570_s13, %s1571_s15  }
 0x6a1 PF: > { %p1352_p1 = scmp.ge.s32.totalorder %s1564_s24, 2  ;;  %s1175_s16 = sand.u32 1, %s1552_s21  }
 0x6a2   : > { %s1176_s25 = scalar_lea.sflag [#allocation3], %s1175_s16 }
 0x6a3   : > { %p1349_p2 = pnand %p1352_p1, %p1649_p6 }
 0x6a5   : > { %1547 = dma.done.wait (!%p1349_p2), %s1176_s25, 1024  }
 0x6a6   : > { %1549 = vsyncadd (!%p1349_p2), %s1176_s25, 4294966272  ;;  %p16_p3 = scmp.ge.s32.totalorder %s1632_s27, 10   ;;  %s1977_s21 = smov %s1556_s22 }
 0x6a7   : > { %s1978_s22 = smov %s1560_s23  ;;  %s1979_s23 = smov %s1643_s30 }
 0x6a8   : > { %s1980_s24 = smov %s1632_s27  ;;  %18 = sbr.rel (!%p16_p3) target bundleno = 3 (0x3), region = 79 }
 0x6af   :  { %1181 = vsyncpa [#allocation3], 1 }
 0x6b0   :  { %1183 = vsyncpa [#allocation3 + $0x1], 1 }

</bundles_post_ra>
